<compile_context>
chip_gen: v7x
topology: tpu7x:2x2x1
jax: 0.10.0
libtpu: 0.0.40
codegen_flags: <defaults>
</compile_context>

<pallas_src>
import math

import jax
import jax.numpy as jnp
from jax import lax
from jax.experimental import pallas as pl
from jax.experimental.pallas import tpu as pltpu


def _mha_kernel(hidden_dim):
    H = hidden_dim

    def kernel(qv_ref, key_ref, w_qv_ref, b_qv_ref, w_k_ref, b_k_ref,
               o_ref, k_sc):
        # Project the FULL key once (grid step 0).  The bf16 result persists
        # in VMEM scratch across all Q-row tiles, so the K projection is never
        # recomputed and its inputs are never re-fetched.
        @pl.when(pl.program_id(0) == 0)
        def _():
            k = jnp.dot(key_ref[...], w_k_ref[...],
                        preferred_element_type=jnp.float32) + b_k_ref[...]
            k_sc[...] = k.astype(jnp.bfloat16)

        # Fused Q+V projection for the current row tile: one MXU matmul (bf16
        # operands, f32 accumulation) + one broadcast bias add.  qv_ref is the
        # [block_q, 2*D_in] tile of concat([query, value], axis=1); w_qv is
        # block-diagonal [2*D_in, 2*H] with the 1/sqrt(H) scale folded into
        # the Q block.
        qv = jnp.dot(qv_ref[...], w_qv_ref[...],
                     preferred_element_type=jnp.float32) + b_qv_ref[...]
        q = qv[:, :H]          # already pre-scaled by 1/sqrt(hidden_dim)
        v = qv[:, H:]

        # scores[s, t] = q[s] . k[t] -- contract last dims, no explicit k.T.
        scores = lax.dot_general(
            q.astype(jnp.bfloat16), k_sc[...],
            dimension_numbers=(((1,), (1,)), ((), ())),
            preferred_element_type=jnp.float32)

        # Numerically-stable softmax (f32); approx reciprocal runs on the EUP.
        m = jnp.max(scores, axis=-1, keepdims=True)
        p = jnp.exp(scores - m)
        denom = jnp.sum(p, axis=-1, keepdims=True)
        attn = p * pl.reciprocal(denom, approx=True)

        # Dropout(p=0.1): eval-mode identity.
        # Elementwise product with V (NOT a matmul -- matches reference code;
        # the same row tile of V lines up with this tile's score rows).
        o_ref[...] = (attn * v).astype(o_ref.dtype)

    return kernel


def pack_params(params, input_dim, hidden_dim):
    """One-time constant transform.

    Packs the Q and V weights block-diagonally into a single [2*D, 2*H]
    matrix (one fused MXU matmul per tile), folds the 1/sqrt(hidden_dim)
    attention scale into the Q block, keeps K weights separate (projected once
    per call inside the kernel), and pre-casts matmul weights to bf16.
    """
    D, H = input_dim, hidden_dim
    inv_sqrt_d = 1.0 / math.sqrt(H)
    w_qv = jnp.zeros((2 * D, 2 * H), jnp.float32)
    w_qv = w_qv.at[0:D, 0:H].set(params["wq"] * inv_sqrt_d)
    w_qv = w_qv.at[D:2 * D, H:2 * H].set(params["wv"])
    b_qv = jnp.concatenate([params["bq"] * inv_sqrt_d, params["bv"]], axis=1)
    return {
        "w_qv": w_qv.astype(jnp.bfloat16),
        "b_qv": b_qv.astype(jnp.float32),
        "w_k": params["wk"].astype(jnp.bfloat16),
        "b_k": params["bk"].astype(jnp.float32),
    }


def multi_head_attention(query, key, value, packed, *, block_q=64):
    """query/key/value: [S, D_in] f32; packed: dict from pack_params."""
    S, D = query.shape
    H = packed["w_k"].shape[1]
    assert S == H, ("reference forward's `attn * value` broadcast requires "
                    "seq_len == hidden_dim")
    assert S % block_q == 0 and block_q % 8 == 0, "block_q must tile S (mult of 8)"

    # Concatenate query and value along features so one matmul against the
    # block-diagonal packed weight yields [q | v] per row tile; bf16 halves
    # the input DMA bytes.
    qv_cat = jnp.concatenate([query, value], axis=1).astype(jnp.bfloat16)
    key_bf16 = key.astype(jnp.bfloat16)

    grid = (S // block_q,)
    return pl.pallas_call(
        _mha_kernel(H),
        out_shape=jax.ShapeDtypeStruct((S, H), jnp.float32),
        grid_spec=pltpu.PrefetchScalarGridSpec(
            num_scalar_prefetch=0,
            grid=grid,
            in_specs=[
                # per-tile rows of concat([query, value], axis=1)
                pl.BlockSpec((block_q, 2 * D), lambda i: (i, 0)),
                # full key input (same block every step -> fetched once)
                pl.BlockSpec((S, D), lambda i: (0, 0)),
                # packed Q|V weight / bias (constants, same block every step)
                pl.BlockSpec((2 * D, 2 * H), lambda i: (0, 0)),
                pl.BlockSpec((1, 2 * H), lambda i: (0, 0)),
                # K weight / bias (used only at grid step 0)
                pl.BlockSpec((D, H), lambda i: (0, 0)),
                pl.BlockSpec((1, H), lambda i: (0, 0)),
            ],
            out_specs=pl.BlockSpec((block_q, H), lambda i: (i, 0)),
            # Projected K persists across grid steps (written at step 0).
            scratch_shapes=[pltpu.VMEM((S, H), jnp.bfloat16)],
        ),
        compiler_params=pltpu.CompilerParams(
            # Step 0 produces the K scratch consumed by later steps -> the
            # grid axis is a sequential ("arbitrary") dependency chain.
            dimension_semantics=("arbitrary",)),
    )(qv_cat, key_bf16, packed["w_qv"], packed["b_qv"],
      packed["w_k"], packed["b_k"])


def _init_linear(key, in_dim, out_dim):
    # Deterministic init mimicking nn.Linear's uniform(-1/sqrt(in), 1/sqrt(in)).
    kw, kb = jax.random.split(key)
    bound = 1.0 / math.sqrt(in_dim)
    # Stored pre-transposed: [in_dim, out_dim] so the math is x @ W + b.
    w = jax.random.uniform(kw, (in_dim, out_dim), jnp.float32, -bound, bound)
    b = jax.random.uniform(kb, (1, out_dim), jnp.float32, -bound, bound)
    return w, b


def _reference(query, key, value, params):
    # Pure-JAX f32 reference of the PyTorch forward (eval-mode dropout).
    H = params["wq"].shape[1]
    q = query @ params["wq"] + params["bq"]
    k = key @ params["wk"] + params["bk"]
    v = value @ params["wv"] + params["bv"]
    attn = jax.nn.softmax((q @ k.T) / math.sqrt(H), axis=-1)
    return attn * v


if __name__ == "__main__":
    input_dim = 64
    hidden_dim = 128      # lane-dense: multiple of 128
    seq_len = 128         # must equal hidden_dim (see layout comment)
    block_q = 64          # 2 grid steps -> exercises the tiled path

    root = jax.random.PRNGKey(0)
    kq, kk, kv, kpq, kpk, kpv = jax.random.split(root, 6)

    query = jax.random.normal(kq, (seq_len, input_dim), jnp.float32)
    key = jax.random.normal(kk, (seq_len, input_dim), jnp.float32)
    value = jax.random.normal(kv, (seq_len, input_dim), jnp.float32)

    wq, bq = _init_linear(kpq, input_dim, hidden_dim)
    wk, bk = _init_linear(kpk, input_dim, hidden_dim)
    wv, bv = _init_linear(kpv, input_dim, hidden_dim)
    params = dict(wq=wq, wk=wk, wv=wv, bq=bq, bk=bk, bv=bv)

    packed = pack_params(params, input_dim, hidden_dim)

    out = multi_head_attention(query, key, value, packed, block_q=block_q)
    out = jax.block_until_ready(out)

    ref = _reference(query, key, value, params)
    # Tolerance relaxed for bf16 matmul operands + approx EUP reciprocal
    # (kernel) vs the pure-f32 reference.
    assert jnp.allclose(out, ref, atol=1e-2, rtol=5e-2), \
        "mismatch vs pure-JAX reference"

    print("KERNEL_OK")
</pallas_src>

<mosaic_0001>
module attributes {stable_mosaic.version = 11 : i64} {
  func.func @kernel(%arg0: i32, %arg1: memref<64x128xbf16, #tpu.memory_space<vmem>>, %arg2: memref<128x64xbf16, #tpu.memory_space<vmem>>, %arg3: memref<128x256xbf16, #tpu.memory_space<vmem>>, %arg4: memref<1x256xf32, #tpu.memory_space<vmem>>, %arg5: memref<64x128xbf16, #tpu.memory_space<vmem>>, %arg6: memref<1x128xf32, #tpu.memory_space<vmem>>, %arg7: memref<64x128xf32, #tpu.memory_space<vmem>>, %arg8: memref<128x128xbf16, #tpu.memory_space<vmem>>) attributes {dimension_semantics = [#tpu.dimension_semantics<arbitrary>], iteration_bounds = array<i64: 2>, scalar_prefetch = 0 : i64, scratch_operands = 1 : i64, tpu.core_type = #tpu.core_type<tc>, window_params = [{transform_indices = @transform_0, window_bounds = array<i64: 64, 128>}, {pipeline_mode = #tpu.pipeline_mode<synchronous>, transform_indices = @transform_1, window_bounds = array<i64: 128, 64>}, {pipeline_mode = #tpu.pipeline_mode<synchronous>, transform_indices = @transform_2, window_bounds = array<i64: 128, 256>}, {pipeline_mode = #tpu.pipeline_mode<synchronous>, transform_indices = @transform_3, window_bounds = array<i64: 1, 256>}, {pipeline_mode = #tpu.pipeline_mode<synchronous>, transform_indices = @transform_4, window_bounds = array<i64: 64, 128>}, {pipeline_mode = #tpu.pipeline_mode<synchronous>, transform_indices = @transform_5, window_bounds = array<i64: 1, 128>}, {transform_indices = @transform_6, window_bounds = array<i64: 64, 128>}]} {
    %c0_i32 = arith.constant 0 : i32
    %0 = arith.cmpi eq, %arg0, %c0_i32 : i32
    %1 = arith.extui %0 : i1 to i32
    %c0_i32_0 = arith.constant 0 : i32
    %2 = arith.cmpi ne, %1, %c0_i32_0 : i32
    scf.if %2 {
      %c0_13 = arith.constant 0 : index
      %c0_14 = arith.constant 0 : index
      %26 = vector.load %arg2[%c0_13, %c0_14] : memref<128x64xbf16, #tpu.memory_space<vmem>>, vector<128x64xbf16>
      %c0_15 = arith.constant 0 : index
      %c0_16 = arith.constant 0 : index
      %27 = vector.load %arg5[%c0_15, %c0_16] : memref<64x128xbf16, #tpu.memory_space<vmem>>, vector<64x128xbf16>
      %cst_17 = arith.constant dense<0.000000e+00> : vector<128x128xf32>
      %28 = tpu.matmul %26, %27, %cst_17 {dimension_numbers = #tpu.dot_dimension_numbers<[1], [0], [0], [1], [0, 0, 1, 1], [], []>} : vector<128x64xbf16>, vector<64x128xbf16>, vector<128x128xf32> -> vector<128x128xf32>
      %c0_18 = arith.constant 0 : index
      %c0_19 = arith.constant 0 : index
      %29 = vector.load %arg6[%c0_18, %c0_19] : memref<1x128xf32, #tpu.memory_space<vmem>>, vector<1x128xf32>
      %30 = vector.broadcast %29 : vector<1x128xf32> to vector<128x128xf32>
      %31 = arith.addf %28, %30 : vector<128x128xf32>
      %32 = arith.truncf %31 : vector<128x128xf32> to vector<128x128xbf16>
      %c0_20 = arith.constant 0 : index
      %c0_21 = arith.constant 0 : index
      %33 = vector.load %arg8[%c0_20, %c0_21] : memref<128x128xbf16, #tpu.memory_space<vmem>>, vector<128x128xbf16>
      tpu.vector_store %arg8[%c0_20, %c0_21], %32 {strides = array<i32>} : memref<128x128xbf16, #tpu.memory_space<vmem>>, vector<128x128xbf16>,
    } else {
    }
    %c0 = arith.constant 0 : index
    %c0_1 = arith.constant 0 : index
    %3 = vector.load %arg1[%c0, %c0_1] : memref<64x128xbf16, #tpu.memory_space<vmem>>, vector<64x128xbf16>
    %c0_2 = arith.constant 0 : index
    %c0_3 = arith.constant 0 : index
    %4 = vector.load %arg3[%c0_2, %c0_3] : memref<128x256xbf16, #tpu.memory_space<vmem>>, vector<128x256xbf16>
    %cst = arith.constant dense<0.000000e+00> : vector<64x256xf32>
    %5 = tpu.matmul %3, %4, %cst {dimension_numbers = #tpu.dot_dimension_numbers<[1], [0], [0], [1], [0, 0, 1, 1], [], []>} : vector<64x128xbf16>, vector<128x256xbf16>, vector<64x256xf32> -> vector<64x256xf32>
    %c0_4 = arith.constant 0 : index
    %c0_5 = arith.constant 0 : index
    %6 = vector.load %arg4[%c0_4, %c0_5] : memref<1x256xf32, #tpu.memory_space<vmem>>, vector<1x256xf32>
    %7 = vector.broadcast %6 : vector<1x256xf32> to vector<64x256xf32>
    %8 = arith.addf %5, %7 : vector<64x256xf32>
    %9 = vector.extract_strided_slice %8 {offsets = [0, 0], sizes = [64, 128], strides = [1, 1]} : vector<64x256xf32> to vector<64x128xf32>
    %10 = vector.extract_strided_slice %8 {offsets = [0, 128], sizes = [64, 128], strides = [1, 1]} : vector<64x256xf32> to vector<64x128xf32>
    %11 = arith.truncf %9 : vector<64x128xf32> to vector<64x128xbf16>
    %c0_6 = arith.constant 0 : index
    %c0_7 = arith.constant 0 : index
    %12 = vector.load %arg8[%c0_6, %c0_7] : memref<128x128xbf16, #tpu.memory_space<vmem>>, vector<128x128xbf16>
    %cst_8 = arith.constant dense<0.000000e+00> : vector<64x128xf32>
    %13 = tpu.matmul %11, %12, %cst_8 {dimension_numbers = #tpu.dot_dimension_numbers<[1], [1], [0], [0], [0, 0, 1, 0], [], []>} : vector<64x128xbf16>, vector<128x128xbf16>, vector<64x128xf32> -> vector<64x128xf32>
    %cst_9 = arith.constant dense<0xFF800000> : vector<64xf32>
    %14 = vector.multi_reduction <maximumf>, %13, %cst_9 [1] : vector<64x128xf32> to vector<64xf32>
    %15 = vector.shape_cast %14 : vector<64xf32> to vector<64x1xf32>
    %16 = vector.broadcast %15 : vector<64x1xf32> to vector<64x128xf32>
    %17 = arith.subf %13, %16 : vector<64x128xf32>
    %18 = math.exp %17 : vector<64x128xf32>
    %cst_10 = arith.constant dense<0.000000e+00> : vector<64xf32>
    %19 = vector.multi_reduction <add>, %18, %cst_10 [1] : vector<64x128xf32> to vector<64xf32>
    %20 = vector.shape_cast %19 : vector<64xf32> to vector<64x1xf32>
    %21 = tpu.reciprocal %20 {approx = true} : vector<64x1xf32> -> vector<64x1xf32>
    %22 = vector.broadcast %21 : vector<64x1xf32> to vector<64x128xf32>
    %23 = arith.mulf %18, %22 : vector<64x128xf32>
    %24 = arith.mulf %23, %10 : vector<64x128xf32>
    %c0_11 = arith.constant 0 : index
    %c0_12 = arith.constant 0 : index
    %25 = vector.load %arg7[%c0_11, %c0_12] : memref<64x128xf32, #tpu.memory_space<vmem>>, vector<64x128xf32>
    tpu.vector_store %arg7[%c0_11, %c0_12], %24 {strides = array<i32>} : memref<64x128xf32, #tpu.memory_space<vmem>>, vector<64x128xf32>,
    return
  }
  func.func @transform_0(%arg0: i32) -> (i32, i32) {
    %c0_i32 = arith.constant 0 : i32
    %c0_i32_0 = arith.constant 0 : i32
    return %arg0, %c0_i32 : i32, i32
  }
  func.func @transform_1(%arg0: i32) -> (i32, i32) {
    %c0_i32 = arith.constant 0 : i32
    %c0_i32_0 = arith.constant 0 : i32
    %c0_i32_1 = arith.constant 0 : i32
    return %c0_i32, %c0_i32_0 : i32, i32
  }
  func.func @transform_2(%arg0: i32) -> (i32, i32) {
    %c0_i32 = arith.constant 0 : i32
    %c0_i32_0 = arith.constant 0 : i32
    %c0_i32_1 = arith.constant 0 : i32
    return %c0_i32, %c0_i32_0 : i32, i32
  }
  func.func @transform_3(%arg0: i32) -> (i32, i32) {
    %c0_i32 = arith.constant 0 : i32
    %c0_i32_0 = arith.constant 0 : i32
    %c0_i32_1 = arith.constant 0 : i32
    return %c0_i32, %c0_i32_0 : i32, i32
  }
  func.func @transform_4(%arg0: i32) -> (i32, i32) {
    %c0_i32 = arith.constant 0 : i32
    %c0_i32_0 = arith.constant 0 : i32
    %c0_i32_1 = arith.constant 0 : i32
    return %c0_i32, %c0_i32_0 : i32, i32
  }
  func.func @transform_5(%arg0: i32) -> (i32, i32) {
    %c0_i32 = arith.constant 0 : i32
    %c0_i32_0 = arith.constant 0 : i32
    %c0_i32_1 = arith.constant 0 : i32
    return %c0_i32, %c0_i32_0 : i32, i32
  }
  func.func @transform_6(%arg0: i32) -> (i32, i32) {
    %c0_i32 = arith.constant 0 : i32
    %c0_i32_0 = arith.constant 0 : i32
    return %arg0, %c0_i32 : i32, i32
  }
}

</mosaic_0001>

<bundles_post_ra>
// kernel: tpu_custom_call.1
= control target key start
LH: loop header
LB: loop body
LE: loop exit
PB: predicated region body
PF: predicated region fallthrough
CT: control target
= control target key end

     0   :  { %11 = vsyncpa [#allocation4], 0  ;;  %s1617_s0 = inlined_call_operand.vmem [shape: bf16[128,128], index: 0, kind: input, shape index: {}]   ;;  %s1618_s1 = inlined_call_operand.vmem [shape: bf16[128,64], index: 1, kind: input, shape index: {}]   ;;  %s1619_s2 = inlined_call_operand.hbm [shape: bf16[128,256], index: 2, kind: input, shape index: {}]   ;;  %s1620_s3 = inlined_call_operand.vmem [shape: f32[1,256], index: 3, kind: input, shape index: {}]   ;;  %s1621_s4 = inlined_call_operand.vmem [shape: bf16[64,128], index: 4, kind: input, shape index: {}]   ;;  %s1622_s5 = inlined_call_operand.vmem [shape: f32[1,128], index: 5, kind: input, shape index: {}]   ;;  %s1623_s6 = inlined_call_operand.hbm [shape: f32[128,128], index: 6, kind: output, shape index: {}]  }
   0x1   :  { %12 = vsyncpa [#allocation5], 0 }
   0x2   :  { %14 = vsyncpa [#allocation5 + $0x1], 0  ;;  %s1374_s21 = smov 0   ;;  %s1376_s22 = smov 0  }
   0x3   :  { %s1378_s23 = smov 0   ;;  %s1380_s24 = smov 0  }
   0x4 LB: > { %s1395_s25 = sadd.s32 4294967295, %s1330_s24   ;;  %s972_s26 = sadd.s32 4294967294, %s1330_s24   ;;  %s1330_s24 = sphi %s1380_s24, %s1640_s24   ;;  %s1326_s23 = sphi %s1378_s23, %s1639_s23   ;;  %s1322_s22 = sphi %s1376_s22, %s1638_s22   ;;  %s1318_s21 = sphi %s1374_s21, %s1637_s21  }
   0x5   : > { %s1399_s27 = sadd.s32 1, %s1330_s24   ;;  %s158_s28 = sadd.s32 1, %s1326_s23 }
   0x6   : > { %s155_s29 = ssub.s32 %s1330_s24, %s1399_s27  ;;  %p168_p0 = scmp.ne.s32.totalorder %s1326_s23, %s1322_s22 }
   0x7   : > { %p156_p1 = scmp.eq.s32.totalorder %s155_s29, 0  ;;  %p169_p2 = scmp.eq.s32.totalorder %s1395_s25, 1 }
   0x8   : > { %p174_p3 = scmp.ne.s32.totalorder %s1322_s22, %s1318_s21  ;;  %p175_p4 = scmp.eq.s32.totalorder %s972_s26, 1 }
   0x9   : > { %s1410_s30 = scalar_select %p156_p1, %s1326_s23, %s158_s28  }
   0xa   : > { %p1412_p5 = por %p169_p2, %p168_p0  ;;  %p1416_p6 = por %p175_p4, %p174_p3 }
   0xb   : > { %p973_p7 = scmp.ge.s32.totalorder %s1330_s24, 1  ;;  %p182_p8 = scmp.lt.s32.totalorder %s1330_s24, 3 }
   0xc   : > { %s1627_s7 = scalar_select %p1412_p5, 1, 0 }
   0xd   : > { %s1628_s8 = scalar_select %p1416_p6, 1, 0 }
   0xe   : > { %p1624_p10 = scmp.eq.s32.totalorder %s1395_s25, 0  ;;  %p1424_p11 = pnand %p973_p7, %p182_p8 }
   0xf   : > { %s1332_s10 = smov [#allocation3]   ;;  %s1236_s15 = scalar_lea.hbm %s1619_s2, 2048 }
  0x10   : > { %s1629_s9 = scalar_select %p1424_p11, 1, 0 }
  0x11   : > { %s197_s11 = sshll.u32 %s1332_s10, 4  ;;  %p1115_p12 = pneg %p1424_p11  ;;  %s198_s11 = int_to_ptr.vmem [resolvable:$true] %s197_s11 }
  0x12   : > { %p1237_p0 = scmp.ne.s32.totalorder %s1619_s2, %s1236_s15  ;;  %p1243_p4 = scmp.lt.u32.totalorder %s1236_s15, %s1619_s2 }
  0x13   : > { %p1432_p13 = pnand %p1624_p10, %p1115_p12 }
  0x15   : > { %p1238_p1 = pneg %p1432_p13 }
  0x17   : > { %p1239_p2 = pnand %p1238_p1, %p1237_p0 }
  0x19   : > { %p1240_p3 = pneg %p1239_p2 }
  0x1b   : > { %p1245_p7 = pnand %p1243_p4, %p1240_p3 }
  0x1d   : > { %1248 = shalt.err (!%p1245_p7)
}
  0x1e   : > { %s1249_s20 = scalar_lea.vmem %s198_s11, 2048  ;;  %p1257_p10 = scmp.lt.s32.totalorder %s198_s11, %s198_s11 }
  0x1f   : > { %p1250_p8 = scmp.ne.s32.totalorder %s198_s11, %s1249_s20  ;;  %p1258_p6 = scmp.lt.s32.totalorder %s1249_s20, %s1249_s20 }
  0x21   : > { %p1252_p12 = pnand %p1250_p8, %p1238_p1  ;;  %p1259_p5 = por %p1258_p6, %p1257_p10 }
  0x23   : > { %p1253_p9 = pneg %p1252_p12 }
  0x25   : > { %p1260_p11 = pnand %p1259_p5, %p1253_p9 }
  0x27   : > { %1263 = shalt.err (!%p1260_p11)
}
  0x28   : > { %s1333_s26 = smov 128   ;;  %s1334_s28 = smov 8  }
  0x29   : > { %1118 = dma.hbm_to_vmem [thread:$0]  (!%p1432_p13), %s1619_s2, 2048, %s198_s11, [#allocation4], %s1333_s26, %s1333_s26, %s1334_s28  }
  0x2a   : > { %p1631_p0 = scmp.ne.s32.totalorder %s1629_s9, 0 }
  0x2b   : > { %p1632_p2 = scmp.eq.s32.totalorder (!%p1631_p0), %s1395_s25, 0 }
  0x2c   : > { %231 = sbr.rel (%p1631_p0) target bundleno = 1123 (0x463), region = 44 }
  0x33   : > { %1309 = dma.done.wait (%p1632_p2), [#allocation4], 2048   ;;  %p1633_p1 = pmov %p1632_p2 }
  0x34   : > { %s258_s13 = sand.u32 1, %s1322_s22   ;;  %s979_s14 = sshll.u32 %s1395_s25, 3 }
  0x35   : > { %1311 = vsyncadd (%p1633_p1), [#allocation4], 4294965248  ;;  %s978_s12 = sshll.u32 %s258_s13, 6  ;;  %p262_p5 = scmp.lt.s32.totalorder %s979_s14, 15 }
  0x36   : > { %s1467_s17 = scalar_lea.vmem [#allocation6], %s978_s12  ;;  %p1634_p6 = scmp.ne.s32.totalorder %s1395_s25, 0 }
  0x37   : > { %s1642_s14 = smov (!%p262_p5, %s979_s14), 15  ;;  %v1164_v0 = vld [vmem:[%s1621_s4] sm:$0xff] (!%p1634_p6)   ;;  %v1165_v1 = vld [vmem:[%s1621_s4 + $0x8] sm:$0xff] (!%p1634_p6)   ;;  %v1166_v2 = vld [vmem:[%s1621_s4 + $0x10] sm:$0xff] (!%p1634_p6)   ;;  %vm368_vm0 = vcmask (!%p1634_p6), 523264  }
  0x38   : > { %s980_s15 = sshll.u32 %s1642_s14, 2  ;;  %272 = sbr.rel (%p1634_p6) target bundleno = 300 (0x12c), region = 52  ;;  %1053 = vmatprep.subr.bf16.mxu0 (!%p1634_p6), %v1164_v0  ;;  %1101 = vmatprep.subr.bf16.mxu1 (!%p1634_p6), %v1164_v0  ;;  %v1168_v3 = vld [vmem:[%s1618_s1] sm:$0xff] (!%p1634_p6)   ;;  %v1167_v5 = vld [vmem:[%s1621_s4 + $0x18] sm:$0xff] (!%p1634_p6)   ;;  %v1170_v6 = vld [vmem:[%s1618_s1 + $0x8] sm:$0xff] (!%p1634_p6)  }
  0x39   : > { %s1465_s9 = scalar_lea.vmem %s1617_s0, %s980_s15  ;;  %1054 = vmatpush3.bf16.msra.mxu0 (!%p1634_p6), %v1164_v0  ;;  %1105 = vmatpush3.bf16.msra.mxu1 (!%p1634_p6), %v1164_v0  ;;  %v1169_v4 = vld [vmem:[%s1618_s1 + $0x20] sm:$0xff] (!%p1634_p6)   ;;  %v1171_v7 = vld [vmem:[%s1618_s1 + $0x28] sm:$0xff] (!%p1634_p6)   ;;  %v1172_v8 = vld [vmem:[%s1618_s1 + $0x10] sm:$0xff] (!%p1634_p6)  }
  0x3a   : > { %1055 = vmatprep.subr.bf16.mxu0 (!%p1634_p6), %v1165_v1  ;;  %1102 = vmatprep.subr.bf16.mxu1 (!%p1634_p6), %v1165_v1  ;;  %v1173_v9 = vld [vmem:[%s1618_s1 + $0x30] sm:$0xff] (!%p1634_p6)   ;;  %v1174_v10 = vld [vmem:[%s1618_s1 + $0x18] sm:$0xff] (!%p1634_p6)   ;;  %v982_v13 = vld [vmem:[%s1622_s5] ss:$0 sm:$0xff] (!%p1634_p6) }
  0x3b   : > { %1061 = vmatprep.mubr.msk.bf16.mxu0 (!%p1634_p6), %vm368_vm0, %v1168_v3  ;;  %1069 = vmatprep.mubr.msk.bf16.mxu1 (!%p1634_p6), %vm368_vm0, %v1169_v4  ;;  %v1175_v11 = vld [vmem:[%s1618_s1 + $0x38] sm:$0xff] (!%p1634_p6)  }
  0x3d   : > { %1056 = vmatpush3.bf16.msra.mxu0 (!%p1634_p6), %v1165_v1  ;;  %1106 = vmatpush3.bf16.msra.mxu1 (!%p1634_p6), %v1165_v1 }
  0x3e   : > { %1057 = vmatprep.subr.bf16.mxu0 (!%p1634_p6), %v1166_v2  ;;  %1103 = vmatprep.subr.bf16.mxu1 (!%p1634_p6), %v1166_v2 }
  0x41   : > { %1058 = vmatpush3.bf16.msra.mxu0 %v1166_v2  ;;  %1107 = vmatpush3.bf16.msra.mxu1 %v1166_v2 }
  0x42   : > { %1059 = vmatprep.subr.bf16.mxu0 %v1167_v5  ;;  %1104 = vmatprep.subr.bf16.mxu1 %v1167_v5 }
  0x45   : > { %1060 = vmatpush3.bf16.msra.mxu0 %v1167_v5  ;;  %1108 = vmatpush3.bf16.msra.mxu1 %v1167_v5 }
  0x48   : > { %1062 = vmatmul.mubr.msk.bf16.vlgmr.msra.gmra.mrb[0].mxu0 %vm368_vm0, %v1170_v6  ;;  %1070 = vmatmul.mubr.msk.bf16.vlgmr.msra.gmra.mrb[0].mxu1 %vm368_vm0, %v1171_v7 }
  0x49   : > { %1065 = vmatprep.mubr.msk.bf16.mxu0 %vm368_vm0, %v1172_v8  ;;  %1073 = vmatprep.mubr.msk.bf16.mxu1 %vm368_vm0, %v1173_v9 }
  0x50   : > { %1066 = vmatmul.mubr.msk.bf16.gmra.mrb[4].mxu0 %vm368_vm0, %v1174_v10  ;;  %1074 = vmatmul.mubr.msk.bf16.gmra.mrb[4].mxu1 %vm368_vm0, %v1175_v11 }
 0x11b   : > { %v1063_v12 = vpop.f32.mrb[0].mxu0  ;;  %v1071_v14 = vpop.f32.mrb[0].mxu1 }
 0x11c   : > { %v427_v15 = vpop.f32.mrb[1].mxu0  ;;  %v459_v16 = vpop.f32.mrb[1].mxu1  ;;  %v436_v19 = vadd.f32 %v1063_v12, %v982_v13  ;;  %v468_v20 = vadd.f32 %v1071_v14, %v982_v13 }
 0x11d   : > { %v1064_v17 = vpop.f32.mrb[2].mxu0  ;;  %v1072_v18 = vpop.f32.mrb[2].mxu1  ;;  %v428_v25 = vadd.f32 %v982_v13, %v427_v15  ;;  %v460_v26 = vadd.f32 %v982_v13, %v459_v16 }
 0x11e   : > { %v439_v21 = vadd.f32 %v1064_v17, %v982_v13  ;;  %v471_v22 = vadd.f32 %v1072_v18, %v982_v13  ;;  %v430_v23 = vpop.f32.mrb[3].mxu0  ;;  %v462_v24 = vpop.f32.mrb[3].mxu1 }
 0x11f   : > { %v431_v27 = vadd.f32 %v982_v13, %v430_v23  ;;  %v463_v28 = vadd.f32 %v982_v13, %v462_v24 }
 0x120   : > { %v491_v29 = vpack.c.bf16 %v439_v21, %v436_v19  ;;  %v495_v30 = vpack.c.bf16 %v471_v22, %v468_v20 }
 0x121   : > { %v490_v31 = vpack.c.bf16 %v431_v27, %v428_v25  ;;  %v494_v32 = vpack.c.bf16 %v463_v28, %v460_v26 }
 0x122   : > { %499 = vst [vmem:[#allocation2 + $0x8] sm:$0xff] %v491_v29  ;;  %503 = vst [vmem:[#allocation2 + $0x28] sm:$0xff] %v495_v30 }
 0x123   : > { %498 = vst [vmem:[#allocation2] sm:$0xff] %v490_v31  ;;  %502 = vst [vmem:[#allocation2 + $0x20] sm:$0xff] %v494_v32  ;;  %v1067_v33 = vpop.f32.mrb[4].mxu0  ;;  %v1075_v34 = vpop.f32.mrb[4].mxu1 }
 0x124   : > { %v443_v35 = vpop.f32.mrb[5].mxu0  ;;  %v475_v36 = vpop.f32.mrb[5].mxu1  ;;  %v452_v39 = vadd.f32 %v1067_v33, %v982_v13  ;;  %v484_v40 = vadd.f32 %v1075_v34, %v982_v13 }
 0x125   : > { %v1068_v37 = vpop.f32.mrb[6].mxu0  ;;  %v1076_v38 = vpop.f32.mrb[6].mxu1  ;;  %v444_v45 = vadd.f32 %v982_v13, %v443_v35  ;;  %v476_v46 = vadd.f32 %v982_v13, %v475_v36 }
 0x126   : > { %v455_v41 = vadd.f32 %v1068_v37, %v982_v13  ;;  %v487_v42 = vadd.f32 %v1076_v38, %v982_v13  ;;  %v446_v43 = vpop.f32.mrb[7].mxu0  ;;  %v478_v44 = vpop.f32.mrb[7].mxu1 }
 0x127   : > { %v447_v47 = vadd.f32 %v982_v13, %v446_v43  ;;  %v479_v48 = vadd.f32 %v982_v13, %v478_v44 }
 0x128   : > { %v493_v49 = vpack.c.bf16 %v455_v41, %v452_v39  ;;  %v497_v50 = vpack.c.bf16 %v487_v42, %v484_v40 }
 0x129   : > { %v492_v51 = vpack.c.bf16 %v447_v47, %v444_v45  ;;  %v496_v52 = vpack.c.bf16 %v479_v48, %v476_v46 }
 0x12a   : > { %501 = vst [vmem:[#allocation2 + $0x18] sm:$0xff] %v493_v49  ;;  %505 = vst [vmem:[#allocation2 + $0x38] sm:$0xff] %v497_v50 }
 0x12b   : > { %500 = vst [vmem:[#allocation2 + $0x10] sm:$0xff] %v492_v51  ;;  %504 = vst [vmem:[#allocation2 + $0x30] sm:$0xff] %v496_v52 }
 0x12c PF: > { %v1176_v53 = vld [vmem:[#allocation3 + $0x4] ss:$8 sps:$4 sm:$0xff]   ;;  %v1178_v54 = vld [vmem:[#allocation3] ss:$8 sps:$4 sm:$0xff]   ;;  %v1335_v55 = vmov 0   ;;  %v1202_v13 = vld [vmem:[%s1465_s9 + $0x10] sm:$0xff]   ;;  %v532_v18 = vlaneseq }
 0x12d   : > { %678 = vmatprep.mubr.bf16.mxu0 %v1335_v55  ;;  %646 = vmatprep.subr.bf16.mxu0 %v1176_v53  ;;  %v1179_v56 = vld [vmem:[#allocation3 + $0x14] ss:$8 sps:$4 sm:$0xff]   ;;  %v1181_v57 = vld [vmem:[#allocation3 + $0x10] ss:$8 sps:$4 sm:$0xff]   ;;  %v1182_v58 = vld [vmem:[#allocation3 + $0x24] ss:$8 sps:$4 sm:$0xff]  }
 0x12e   : > { %647 = vmatpush1.bf16.msra.mxu0 %v1178_v54  ;;  %v1184_v59 = vld [vmem:[#allocation3 + $0x20] ss:$8 sps:$4 sm:$0xff]   ;;  %v1185_v60 = vld [vmem:[#allocation3 + $0x34] ss:$8 sps:$4 sm:$0xff]   ;;  %v1187_v61 = vld [vmem:[#allocation3 + $0x30] ss:$8 sps:$4 sm:$0xff]  }
 0x12f   : > { %648 = vmatprep.subr.bf16.mxu0 %v1179_v56  ;;  %v1188_v62 = vld [vmem:[#allocation3 + $0x44] ss:$8 sps:$4 sm:$0xff]   ;;  %v1190_v0 = vld [vmem:[#allocation3 + $0x40] ss:$8 sps:$4 sm:$0xff]   ;;  %v1191_v2 = vld [vmem:[#allocation3 + $0x54] ss:$8 sps:$4 sm:$0xff]  }
 0x130   : > { %v723_v63 = vld [vmem:[#allocation2] sm:$0xff]  ;;  %v724_v1 = vld [vmem:[#allocation2 + $0x8] sm:$0xff]  ;;  %v1193_v3 = vld [vmem:[#allocation3 + $0x50] ss:$8 sps:$4 sm:$0xff]   ;;  %v1522_v19 = vshrl.u32 %v532_v18, 7  ;;  %s898_s28 = sshll.u32 %s1467_s17, 4  ;;  %s1570_s28 = int_to_ptr.vmem [resolvable:$true] %s898_s28 }
 0x131   : > { %1077 = vmatprep.subr.bf16.mxu1 %v723_v63  ;;  %v1194_v4 = vld [vmem:[#allocation3 + $0x64] ss:$8 sps:$4 sm:$0xff]   ;;  %v1196_v6 = vld [vmem:[#allocation3 + $0x60] ss:$8 sps:$4 sm:$0xff]   ;;  %v1197_v7 = vld [vmem:[#allocation3 + $0x74] ss:$8 sps:$4 sm:$0xff]  }
 0x132   : > { %649 = vmatpush1.bf16.msra.mxu0 %v1181_v57  ;;  %1078 = vmatpush3.bf16.xpose.msra.mxu1 %v723_v63  ;;  %v725_v5 = vld [vmem:[#allocation2 + $0x10] sm:$0xff]  ;;  %v1200_v9 = vld [vmem:[%s1465_s9] sm:$0xff]   ;;  %v726_v10 = vld [vmem:[#allocation2 + $0x18] sm:$0xff]  ;;  %v534_v20 = vsub.s32 0, %v1522_v19  ;;  %s1264_s12 = scalar_lea.vmem %s1570_s28, 1024  ;;  %p1635_p10 = scmp.ne.s32.totalorder %s1627_s7, 0 }
 0x133   : > { %650 = vmatprep.subr.bf16.mxu0 %v1182_v58  ;;  %1079 = vmatprep.subr.bf16.mxu1 %v724_v1  ;;  %v1199_v8 = vld [vmem:[#allocation3 + $0x70] ss:$8 sps:$4 sm:$0xff]   ;;  %v1201_v11 = vld [vmem:[%s1465_s9 + $0x8] sm:$0xff]   ;;  %v727_v12 = vld [vmem:[#allocation2 + $0x20] sm:$0xff]  ;;  %p1265_p9 = scmp.ne.s32.totalorder %s1570_s28, %s1264_s12  ;;  %s1336_s15 = smov [#allocation6]  }
 0x134   : > { %v728_v14 = vld [vmem:[#allocation2 + $0x28] sm:$0xff]  ;;  %v1203_v15 = vld [vmem:[%s1465_s9 + $0x18] sm:$0xff]   ;;  %v729_v16 = vld [vmem:[#allocation2 + $0x30] sm:$0xff]  ;;  %s1028_s9 = sshll.u32 %s1395_s25, 10  ;;  %s1576_s25 = scalar_lea.sflag [#allocation5], %s258_s13 }
 0x135   : > { %v730_v17 = vld [vmem:[#allocation2 + $0x38] sm:$0xff]  ;;  %v1528_v21 = vld [vmem:[%s1620_s3] sm:$0x3]  ;;  %s1568_s14 = scalar_lea.hbm %s1623_s6, %s1028_s9  ;;  %p1266_p11 = pnand %p1265_p9, %p1635_p10 }
 0x136   : > { %651 = vmatpush1.bf16.msra.mxu0 %v1184_v59  ;;  %v535_v22 = vrot.slane %v1528_v21, %v534_v20  ;;  %s1268_s11 = sshll.u32 %s1336_s15, 4  ;;  %s1269_s11 = int_to_ptr.vmem [resolvable:$false] %s1268_s11 }
 0x137   : > { %652 = vmatprep.subr.bf16.mxu0 %v1185_v60  ;;  %p1267_p13 = pneg %p1266_p11  ;;  %s1270_s16 = scalar_lea.vmem %s1269_s11, 2048 }
 0x138   : > { %p1271_p3 = scmp.lt.s32.totalorder %s1570_s28, %s1269_s11  ;;  %p1272_p4 = scmp.lt.s32.totalorder %s1270_s16, %s1264_s12 }
 0x13a   : > { %653 = vmatpush1.bf16.msra.mxu0 %v1187_v61  ;;  %1080 = vmatpush3.bf16.xpose.msra.mxu1 %v724_v1  ;;  %p1273_p7 = por %p1272_p4, %p1271_p3 }
 0x13b   : > { %654 = vmatprep.subr.bf16.mxu0 %v1188_v62  ;;  %1081 = vmatprep.subr.bf16.mxu1 %v725_v5 }
 0x13c   : > { %p1274_p8 = pnand %p1273_p7, %p1267_p13 }
 0x13e   : > { %655 = vmatpush1.bf16.msra.mxu0 %v1190_v0 }
 0x13f   : > { %656 = vmatprep.subr.bf16.mxu0 %v1191_v2 }
 0x142   : > { %657 = vmatpush1.bf16.msra.mxu0 %v1193_v3  ;;  %1082 = vmatpush3.bf16.xpose.msra.mxu1 %v725_v5 }
 0x143   : > { %658 = vmatprep.subr.bf16.mxu0 %v1194_v4  ;;  %1083 = vmatprep.subr.bf16.mxu1 %v726_v10 }
 0x146   : > { %659 = vmatpush1.bf16.msra.mxu0 %v1196_v6 }
 0x147   : > { %660 = vmatprep.subr.bf16.mxu0 %v1197_v7 }
 0x14a   : > { %661 = vmatpush1.bf16.msra.mxu0 %v1199_v8  ;;  %1084 = vmatpush3.bf16.xpose.msra.mxu1 %v726_v10 }
 0x14b   : > { %1085 = vmatprep.subr.bf16.mxu1 %v727_v12 }
 0x14d   : > { %679 = vmatmul.mubr.bf16.vlgmr.msra.gmra.mrb[0].mxu0 %v1200_v9 }
 0x14e   : > { %688 = vmatprep.mubr.bf16.mxu0 %v1335_v55 }
 0x152   : > { %1086 = vmatpush3.bf16.xpose.msra.mxu1 %v727_v12 }
 0x153   : > { %1087 = vmatprep.subr.bf16.mxu1 %v728_v14 }
 0x155   : > { %689 = vmatmul.mubr.bf16.gmra.mrb[4].mxu0 %v1201_v11 }
 0x156   : > { %698 = vmatprep.mubr.bf16.mxu0 %v1335_v55 }
 0x15a   : > { %1088 = vmatpush3.bf16.xpose.msra.mxu1 %v728_v14 }
 0x15b   : > { %1089 = vmatprep.subr.bf16.mxu1 %v729_v16 }
 0x15d   : > { %699 = vmatmul.mubr.bf16.gmra.mrb[8].mxu0 %v1202_v13 }
 0x15e   : > { %708 = vmatprep.mubr.bf16.mxu0 %v1335_v55 }
 0x162   : > { %1090 = vmatpush3.bf16.xpose.msra.mxu1 %v729_v16 }
 0x163   : > { %1091 = vmatprep.subr.bf16.mxu1 %v730_v17 }
 0x165   : > { %709 = vmatmul.mubr.bf16.gmra.mrb[12].mxu0 %v1203_v15 }
 0x16a   : > { %1092 = vmatpush3.bf16.xpose.msra.mxu1 %v730_v17 }
 0x220   : > { %v680_v23 = vpop.f32.mrb[0].mxu0 }
 0x221   : > { %v1531_v24 = vpop.f32.mrb[1].mxu0  ;;  %v681_v26 = vadd.f32 %v680_v23, %v535_v22 }
 0x222   : > { %v684_v25 = vpop.f32.mrb[2].mxu0 }
 0x223   : > { %v685_v27 = vadd.f32 %v684_v25, %v535_v22  ;;  %v1533_v28 = vpop.f32.mrb[3].mxu0 }
 0x225   : > { %v719_v29 = vpack.c.bf16 %v685_v27, %v681_v26 }
 0x227   : > { %1093 = vmatprep.mubr.bf16.mxu1 %v719_v29 }
 0x228   : > { %v690_v30 = vpop.f32.mrb[4].mxu0 }
 0x229   : > { %v1535_v31 = vpop.f32.mrb[5].mxu0  ;;  %v691_v33 = vadd.f32 %v690_v30, %v535_v22 }
 0x22a   : > { %v694_v32 = vpop.f32.mrb[6].mxu0 }
 0x22b   : > { %v695_v34 = vadd.f32 %v694_v32, %v535_v22  ;;  %v1537_v35 = vpop.f32.mrb[7].mxu0 }
 0x22d   : > { %v720_v36 = vpack.c.bf16 %v695_v34, %v691_v33 }
 0x22f   : > { %1094 = vmatmul.mubr.bf16.vlgmr.msra.gmra.mrb[0].mxu1 %v720_v36  ;;  %v538_v36 = vsub.s32 1, %v1522_v19 }
 0x230   : > { %v700_v37 = vpop.f32.mrb[8].mxu0 }
 0x231   : > { %v1539_v38 = vpop.f32.mrb[9].mxu0  ;;  %v701_v40 = vadd.f32 %v700_v37, %v535_v22 }
 0x232   : > { %v704_v39 = vpop.f32.mrb[10].mxu0 }
 0x233   : > { %v705_v41 = vadd.f32 %v704_v39, %v535_v22  ;;  %v1541_v42 = vpop.f32.mrb[11].mxu0  ;;  %v539_v39 = vrot.slane %v1528_v21, %v538_v36 }
 0x235   : > { %v721_v43 = vpack.c.bf16 %v705_v41, %v701_v40  ;;  %v693_v41 = vadd.f32 %v1535_v31, %v539_v39  ;;  %v697_v19 = vadd.f32 %v1537_v35, %v539_v39 }
 0x237   : > { %1097 = vmatprep.mubr.bf16.mxu1 %v721_v43 }
 0x238   : > { %v710_v44 = vpop.f32.mrb[12].mxu0 }
 0x239   : > { %v1543_v45 = vpop.f32.mrb[13].mxu0  ;;  %v711_v47 = vadd.f32 %v710_v44, %v535_v22 }
 0x23a   : > { %v714_v46 = vpop.f32.mrb[14].mxu0 }
 0x23b   : > { %v715_v48 = vadd.f32 %v714_v46, %v535_v22  ;;  %v1545_v49 = vpop.f32.mrb[15].mxu0 }
 0x23d   : > { %v722_v50 = vpack.c.bf16 %v715_v48, %v711_v47  ;;  %v683_v48 = vadd.f32 %v1531_v24, %v539_v39 }
 0x23f   : > { %1098 = vmatmul.mubr.bf16.gmra.mrb[4].mxu1 %v722_v50 }
 0x302   : > { %v1095_v51 = vpop.f32.mrb[0].mxu1 }
 0x303   : > { %800 = vmax.xlane.f32.xlu1 %v1095_v51  ;;  %v765_v52 = vpop.f32.mrb[1].mxu1 }
 0x304   : > { %796 = vmax.xlane.f32.xlu0 %v765_v52  ;;  %v1096_v53 = vpop.f32.mrb[2].mxu1 }
 0x305   : > { %v768_v54 = vpop.f32.mrb[3].mxu1 }
 0x307   : > { %802 = vmax.xlane.f32.xlu1 %v1096_v53 }
 0x308   : > { %798 = vmax.xlane.f32.xlu0 %v768_v54 }
 0x312   : > { %v1099_v55 = vpop.f32.mrb[4].mxu1 }
 0x313   : > { %v781_v56 = vpop.f32.mrb[5].mxu1 }
 0x314   : > { %804 = vmax.xlane.f32.xlu0 %v781_v56  ;;  %v1100_v57 = vpop.f32.mrb[6].mxu1 }
 0x315   : > { %v784_v58 = vpop.f32.mrb[7].mxu1 }
 0x316   : > { %806 = vmax.xlane.f32.xlu1 %v784_v58 }
 0x318   : > { %808 = vmax.xlane.f32.xlu0 %v1099_v55 }
 0x31a   : > { %810 = vmax.xlane.f32.xlu1 %v1100_v57 }
 0x390   : > { %v801_v59 = vpop.xlane.xlu1 %800 }
 0x391   : > { %v814_v60 = vsub.f32 %v1095_v51, %v801_v59  ;;  %v797_v61 = vpop.xlane.xlu0 %796  ;;  %v703_v59 = vadd.f32 %v1539_v38, %v539_v39  ;;  %v717_v38 = vadd.f32 %v1545_v49, %v539_v39 }
 0x392   : > { %v812_v62 = vsub.f32 %v765_v52, %v797_v61 }
 0x393   : > { %v824_v63 = vmul.f32 1.442695, %v814_v60 }
 0x394   : > { %v820_v0 = vmul.f32 1.442695, %v812_v62  ;;  %v803_v1 = vpop.xlane.xlu1 %802 }
 0x395   : > { %1204 = vpow2.f32 %v824_v63  ;;  %v815_v2 = vsub.f32 %v1096_v53, %v803_v1  ;;  %v799_v3 = vpop.xlane.xlu0 %798  ;;  %v713_v1 = vadd.f32 %v1543_v45, %v539_v39 }
 0x396   : > { %v813_v4 = vsub.f32 %v768_v54, %v799_v3  ;;  %1206 = vpow2.f32 %v820_v0 }
 0x397   : > { %v826_v5 = vmul.f32 1.442695, %v815_v2 }
 0x398   : > { %v822_v6 = vmul.f32 1.442695, %v813_v4 }
 0x399   : > { %1208 = vpow2.f32 %v826_v5 }
 0x39a   : > { %1210 = vpow2.f32 %v822_v6 }
 0x39f   : > { %v1205_v7 = vpop.eup %1204 }
 0x3a0   : > { %840 = vadd.xlane.f32.xlu0 %v1205_v7  ;;  %v1207_v9 = vpop.eup %1206 }
 0x3a1   : > { %v805_v8 = vpop.xlane.xlu0 %804 }
 0x3a2   : > { %v816_v10 = vsub.f32 %v781_v56, %v805_v8 }
 0x3a3   : > { %v1209_v11 = vpop.eup %1208  ;;  %v807_v12 = vpop.xlane.xlu1 %806 }
 0x3a4   : > { %v828_v13 = vmul.f32 1.442695, %v816_v10  ;;  %v817_v14 = vsub.f32 %v784_v58, %v807_v12  ;;  %836 = vadd.xlane.f32.xlu0 %v1207_v9  ;;  %842 = vadd.xlane.f32.xlu1 %v1209_v11  ;;  %v1211_v18 = vpop.eup %1210 }
 0x3a5   : > { %v809_v15 = vpop.xlane.xlu0 %808 }
 0x3a6   : > { %1212 = vpow2.f32 %v828_v13  ;;  %v830_v16 = vmul.f32 1.442695, %v817_v14  ;;  %v818_v17 = vsub.f32 %v1099_v55, %v809_v15  ;;  %v687_v55 = vadd.f32 %v1533_v28, %v539_v39 }
 0x3a7   : > { %v811_v20 = vpop.xlane.xlu1 %810  ;;  %v707_v28 = vadd.f32 %v1541_v42, %v539_v39 }
 0x3a8   : > { %1214 = vpow2.f32 %v830_v16  ;;  %v832_v22 = vmul.f32 1.442695, %v818_v17  ;;  %v819_v23 = vsub.f32 %v1100_v57, %v811_v20  ;;  %838 = vadd.xlane.f32.xlu1 %v1211_v18 }
 0x3aa   : > { %1216 = vpow2.f32 %v832_v22  ;;  %v834_v25 = vmul.f32 1.442695, %v819_v23 }
 0x3ac   : > { %1218 = vpow2.f32 %v834_v25 }
 0x3b0   : > { %v1213_v26 = vpop.eup %1212 }
 0x3b1   : > { %844 = vadd.xlane.f32.xlu0 %v1213_v26 }
 0x3b2   : > { %v1215_v27 = vpop.eup %1214 }
 0x3b3   : > { %846 = vadd.xlane.f32.xlu1 %v1215_v27 }
 0x3b4   : > { %v1217_v29 = vpop.eup %1216 }
 0x3b5   : > { %848 = vadd.xlane.f32.xlu0 %v1217_v29 }
 0x3b6   : > { %v1219_v30 = vpop.eup %1218 }
 0x3b7   : > { %850 = vadd.xlane.f32.xlu1 %v1219_v30 }
 0x42d   : > { %v841_v32 = vpop.xlane.xlu0 %840 }
 0x42e   : > { %1220 = vrcp.f32 %v841_v32 }
 0x431   : > { %v837_v33 = vpop.xlane.xlu0 %836  ;;  %v843_v34 = vpop.xlane.xlu1 %842 }
 0x432   : > { %1222 = vrcp.f32 %v837_v33 }
 0x433   : > { %1224 = vrcp.f32 %v843_v34 }
 0x435   : > { %v839_v37 = vpop.xlane.xlu1 %838 }
 0x436   : > { %1226 = vrcp.f32 %v839_v37 }
 0x438   : > { %v1221_v40 = vpop.eup %1220 }
 0x439   : > { %v862_v43 = vmul.f32 %v1221_v40, %v1205_v7 }
 0x43b   : > { %v870_v44 = vmul.f32 %v862_v43, %v693_v41 }
 0x43c   : > { %v1223_v46 = vpop.eup %1222 }
 0x43d   : > { %v1225_v47 = vpop.eup %1224  ;;  %878 = vst [vmem:[%s1467_s17 + $0x10] sm:$0xff] %v870_v44  ;;  %v860_v50 = vmul.f32 %v1223_v46, %v1207_v9 }
 0x43e   : > { %v863_v51 = vmul.f32 %v1225_v47, %v1209_v11  ;;  %v845_v52 = vpop.xlane.xlu0 %844 }
 0x43f   : > { %v868_v53 = vmul.f32 %v860_v50, %v683_v48  ;;  %1228 = vrcp.f32 %v845_v52 }
 0x440   : > { %v1227_v21 = vpop.eup %1226  ;;  %v871_v54 = vmul.f32 %v863_v51, %v697_v19  ;;  %v847_v31 = vpop.xlane.xlu1 %846 }
 0x441   : > { %876 = vst [vmem:[%s1467_s17] sm:$0xff] %v868_v53  ;;  %v861_v56 = vmul.f32 %v1227_v21, %v1211_v18  ;;  %1230 = vrcp.f32 %v847_v31 }
 0x442   : > { %879 = vst [vmem:[%s1467_s17 + $0x18] sm:$0xff] %v871_v54  ;;  %v849_v24 = vpop.xlane.xlu0 %848 }
 0x443   : > { %v869_v57 = vmul.f32 %v861_v56, %v687_v55  ;;  %1232 = vrcp.f32 %v849_v24 }
 0x444   : > { %v851_v35 = vpop.xlane.xlu1 %850 }
 0x445   : > { %877 = vst [vmem:[%s1467_s17 + $0x8] sm:$0xff] %v869_v57  ;;  %1234 = vrcp.f32 %v851_v35 }
 0x449   : > { %v1229_v58 = vpop.eup %1228 }
 0x44a   : > { %v864_v60 = vmul.f32 %v1229_v58, %v1213_v26 }
 0x44b   : > { %v1231_v61 = vpop.eup %1230 }
 0x44c   : > { %v872_v62 = vmul.f32 %v864_v60, %v703_v59  ;;  %v865_v63 = vmul.f32 %v1231_v61, %v1215_v27 }
 0x44d   : > { %v1233_v0 = vpop.eup %1232 }
 0x44e   : > { %880 = vst [vmem:[%s1467_s17 + $0x20] sm:$0xff] %v872_v62  ;;  %v873_v2 = vmul.f32 %v865_v63, %v707_v28  ;;  %v866_v3 = vmul.f32 %v1233_v0, %v1217_v29 }
 0x44f   : > { %v1235_v4 = vpop.eup %1234 }
 0x450   : > { %881 = vst [vmem:[%s1467_s17 + $0x28] sm:$0xff] %v873_v2  ;;  %v874_v5 = vmul.f32 %v866_v3, %v713_v1  ;;  %v867_v42 = vmul.f32 %v1235_v4, %v1219_v30 }
 0x452   : > { %882 = vst [vmem:[%s1467_s17 + $0x30] sm:$0xff] %v874_v5  ;;  %v875_v45 = vmul.f32 %v867_v42, %v717_v38 }
 0x454   : > { %883 = vst [vmem:[%s1467_s17 + $0x38] sm:$0xff] %v875_v45 }
 0x455   : > { %1277 = shalt.err (!%p1274_p8)
}
 0x456   : > { %s1278_s13 = scalar_lea.hbm %s1568_s14, 1024  ;;  %s1282_s19 = scalar_lea.hbm %s1623_s6, 2048 }
 0x457   : > { %p1279_p12 = scmp.ne.s32.totalorder %s1568_s14, %s1278_s13  ;;  %p1283_p1 = scmp.lt.u32.totalorder %s1568_s14, %s1623_s6 }
 0x458   : > { %p1284_p5 = scmp.lt.u32.totalorder %s1282_s19, %s1278_s13  ;;  %p1286_p9 = scmp.lt.u32.totalorder %s1278_s13, %s1568_s14 }
 0x459   : > { %p1280_p0 = pnand %p1279_p12, %p1635_p10 }
 0x45a   : > { %p1285_p6 = por %p1284_p5, %p1283_p1 }
 0x45b   : > { %p1281_p2 = pneg %p1280_p0 }
 0x45c   : > { %p1287_p11 = por %p1286_p9, %p1285_p6 }
 0x45e   : > { %p1288_p13 = pnand %p1287_p11, %p1281_p2 }
 0x460   : > { %1291 = shalt.err (!%p1288_p13)
}
 0x461   : > { %s1337_s9 = smov 128   ;;  %s1338_s29 = smov 8  }
 0x462   : > { %1113 = dma.vmem_to_hbm [thread:$0]  (%p1635_p10), %s1570_s28, 1024, %s1568_s14, %s1576_s25, %s1337_s9, %s1337_s9, %s1338_s29  }
 0x463 PF: > { %p1125_p3 = scmp.ge.s32.totalorder %s1330_s24, 2  ;;  %s913_s10 = sand.u32 1, %s1318_s21  }
 0x464   : > { %p1636_p4 = scmp.ne.s32.totalorder %s1628_s8, 0  ;;  %s914_s12 = scalar_lea.sflag [#allocation5], %s913_s10 }
 0x466   : > { %p1120_p7 = pnand %p1125_p3, %p1636_p4 }
 0x468   : > { %1313 = dma.done.wait (!%p1120_p7), %s914_s12, 1024  }
 0x469   : > { %1315 = vsyncadd (!%p1120_p7), %s914_s12, 4294966272  ;;  %p17_p8 = scmp.ge.s32.totalorder %s1399_s27, 4   ;;  %s1637_s21 = smov %s1322_s22 }
 0x46a   : > { %s1638_s22 = smov %s1326_s23  ;;  %s1639_s23 = smov %s1410_s30 }
 0x46b   : > { %s1640_s24 = smov %s1399_s27  ;;  %19 = sbr.rel (!%p17_p8) target bundleno = 4 (0x4), region = 88 }
 0x472   :  { %919 = vsyncpa [#allocation4], 1 }
 0x473   :  { %921 = vsyncpa [#allocation4 + $0x1], 1 }
 0x474   :  { %922 = vsyncpa [#allocation5], 1 }
 0x475   :  { %924 = vsyncpa [#allocation5 + $0x1], 1 }

</bundles_post_ra>
